<compile_context>
chip_gen: v5e
topology: v5e:2x2
jax: 0.10.0
libtpu: 0.0.40
codegen_flags: <defaults>
</compile_context>

<pallas_src>
import math
from functools import partial

import jax
import jax.numpy as jnp
from jax.experimental import pallas as pl
from jax.experimental.pallas import tpu as pltpu


def _mha_kernel(x_ref, wq_ref, wk_ref, wv_ref, wo_ref, bias_ref,
                o_ref, acc_ref, *, scale):
    """One (batch, head) grid step.

    x_ref   : (T, D)   input tokens for this batch element
    wq_ref  : (D, dk)  query projection (already transposed, x @ wq)
    wk_ref  : (D, dk)  key projection
    wv_ref  : (D, dv)  value projection
    wo_ref  : (dv, D)  this head's slice of the output projection (Wo^T rows)
    bias_ref: (1, D)   output projection bias
    o_ref   : (T, D)   final MHA output for this batch element
    acc_ref : (T, D)   f32 accumulator, persists across the head axis
    """
    h = pl.program_id(1)

    @pl.when(h == 0)
    def _init():
        acc_ref[...] = jnp.zeros_like(acc_ref)

    x = x_ref[...].astype(jnp.float32)          # (T, D)
    wq = wq_ref[...].astype(jnp.float32)        # (D, dk)
    wk = wk_ref[...].astype(jnp.float32)        # (D, dk)
    wv = wv_ref[...].astype(jnp.float32)        # (D, dv)

    q = jnp.dot(x, wq, preferred_element_type=jnp.float32)   # (T, dk)
    k = jnp.dot(x, wk, preferred_element_type=jnp.float32)   # (T, dk)
    v = jnp.dot(x, wv, preferred_element_type=jnp.float32)   # (T, dv)

    scores = jnp.dot(q, k.T, preferred_element_type=jnp.float32) * scale  # (T, T)

    # Causal mask: positions j > i (strict upper triangle) are masked out.
    row = jax.lax.broadcasted_iota(jnp.int32, scores.shape, 0)
    col = jax.lax.broadcasted_iota(jnp.int32, scores.shape, 1)
    neg_big = jnp.finfo(jnp.float32).min
    scores = jnp.where(col > row, neg_big, scores)

    # Numerically stable softmax over the key axis.
    m = jnp.max(scores, axis=-1, keepdims=True)
    p = jnp.exp(scores - m)
    p = p / jnp.sum(p, axis=-1, keepdims=True)

    # TODO(synk): training-mode attention/output dropout (pltpu.prng_*) omitted;
    # eval-mode dropout is the identity, matching model.eval() semantics.

    head_out = jnp.dot(p, v, preferred_element_type=jnp.float32)          # (T, dv)

    wo = wo_ref[...].astype(jnp.float32)                                  # (dv, D)
    acc_ref[...] += jnp.dot(head_out, wo, preferred_element_type=jnp.float32)

    @pl.when(h == pl.num_programs(1) - 1)
    def _finalize():
        bias = bias_ref[...].astype(jnp.float32)                          # (1, D)
        o_ref[...] = (acc_ref[...] + bias).astype(o_ref.dtype)


def multi_head_attention(x, wq, wk, wv, wo_heads, bias_out):
    """Causal multi-head self-attention.

    x        : (B, T, D)
    wq/wk/wv : (H, D, dk) stacked per-head projections (layout for x @ w)
    wo_heads : (H, dv, D) per-head slices of Wo^T (rows of the transposed
               output-projection weight)
    bias_out : (1, D)     output projection bias
    returns  : (B, T, D)
    """
    B, T, D = x.shape
    H, _, dk = wq.shape
    dv = wv.shape[-1]
    scale = 1.0 / math.sqrt(dk)

    kernel = partial(_mha_kernel, scale=scale)

    return pl.pallas_call(
        kernel,
        out_shape=jax.ShapeDtypeStruct((B, T, D), x.dtype),
        grid_spec=pltpu.PrefetchScalarGridSpec(
            num_scalar_prefetch=0,
            grid=(B, H),  # head axis last: it is the accumulation (reduction) axis
            in_specs=[
                pl.BlockSpec((None, T, D), lambda b, h: (b, 0, 0)),   # x
                pl.BlockSpec((None, D, dk), lambda b, h: (h, 0, 0)),  # wq
                pl.BlockSpec((None, D, dk), lambda b, h: (h, 0, 0)),  # wk
                pl.BlockSpec((None, D, dv), lambda b, h: (h, 0, 0)),  # wv
                pl.BlockSpec((None, dv, D), lambda b, h: (h, 0, 0)),  # wo slice
                pl.BlockSpec((1, D), lambda b, h: (0, 0)),            # bias
            ],
            out_specs=pl.BlockSpec((None, T, D), lambda b, h: (b, 0, 0)),
            scratch_shapes=[pltpu.VMEM((T, D), jnp.float32)],
        ),
        compiler_params=pltpu.CompilerParams(
            dimension_semantics=("parallel", "arbitrary"),
        ),
    )(x, wq, wk, wv, wo_heads, bias_out)


def _reference_mha(x, wq, wk, wv, wo_heads, bias_out):
    """Plain-JAX reference matching the PyTorch module (eval mode)."""
    B, T, D = x.shape
    H, _, dk = wq.shape
    dv = wv.shape[-1]
    mask = jnp.triu(jnp.ones((T, T), dtype=jnp.float32), k=1) == 1.0
    heads = []
    for h in range(H):
        q = x @ wq[h]
        k = x @ wk[h]
        v = x @ wv[h]
        s = (q @ jnp.swapaxes(k, -1, -2)) / jnp.sqrt(jnp.float32(dk))
        s = jnp.where(mask, -jnp.inf, s)
        p = jax.nn.softmax(s, axis=-1)
        heads.append(p @ v)
    concat = jnp.concatenate(heads, axis=-1)          # (B, T, H*dv) == (B, T, D)
    wo_t = wo_heads.reshape(H * dv, D)                # == Wo^T
    return concat @ wo_t + bias_out[0]


if __name__ == "__main__":
    key = jax.random.PRNGKey(0)
    B, T, D, H = 2, 8, 32, 4          # (batch, num_tokens, token_dim, num_heads)
    dk = dv = D // H

    k_x, k_q, k_k, k_v, k_o, k_b = jax.random.split(key, 6)
    x = jax.random.normal(k_x, (B, T, D), dtype=jnp.float32)

    # Per-head projection weights in "x @ W" layout (i.e. PyTorch weight.T).
    wq = jax.random.normal(k_q, (H, D, dk), dtype=jnp.float32) / math.sqrt(D)
    wk = jax.random.normal(k_k, (H, D, dk), dtype=jnp.float32) / math.sqrt(D)
    wv = jax.random.normal(k_v, (H, D, dv), dtype=jnp.float32) / math.sqrt(D)
    # Output projection: Wo^T reshaped into per-head (dv, D) slices, plus bias.
    wo_heads = jax.random.normal(k_o, (H, dv, D), dtype=jnp.float32) / math.sqrt(D)
    bias_out = jax.random.normal(k_b, (1, D), dtype=jnp.float32) * 0.1

    y = multi_head_attention(x, wq, wk, wv, wo_heads, bias_out)
    y = jax.block_until_ready(y)

    ref = _reference_mha(x, wq, wk, wv, wo_heads, bias_out)
    assert y.shape == (B, T, D)
    assert jnp.allclose(y, ref, atol=2e-5, rtol=1e-5), "mismatch vs reference"

    print("KERNEL_OK")
</pallas_src>

<mosaic_0001>
module attributes {stable_mosaic.version = 11 : i64} {
  func.func @_mha_kernel(%arg0: i32, %arg1: i32, %arg2: memref<1x8x32xf32, #tpu.memory_space<vmem>>, %arg3: memref<1x32x8xf32, #tpu.memory_space<vmem>>, %arg4: memref<1x32x8xf32, #tpu.memory_space<vmem>>, %arg5: memref<1x32x8xf32, #tpu.memory_space<vmem>>, %arg6: memref<1x8x32xf32, #tpu.memory_space<vmem>>, %arg7: memref<1x32xf32, #tpu.memory_space<vmem>>, %arg8: memref<1x8x32xf32, #tpu.memory_space<vmem>>, %arg9: memref<8x32xf32, #tpu.memory_space<vmem>>) attributes {dimension_semantics = [#tpu.dimension_semantics<parallel>, #tpu.dimension_semantics<arbitrary>], iteration_bounds = array<i64: 2, 4>, scalar_prefetch = 0 : i64, scratch_operands = 1 : i64, tpu.core_type = #tpu.core_type<tc>, window_params = [{transform_indices = @transform_0, window_bounds = array<i64: 1, 8, 32>}, {transform_indices = @transform_1, window_bounds = array<i64: 1, 32, 8>}, {transform_indices = @transform_2, window_bounds = array<i64: 1, 32, 8>}, {transform_indices = @transform_3, window_bounds = array<i64: 1, 32, 8>}, {transform_indices = @transform_4, window_bounds = array<i64: 1, 8, 32>}, {pipeline_mode = #tpu.pipeline_mode<synchronous>, transform_indices = @transform_5, window_bounds = array<i64: 1, 32>}, {transform_indices = @transform_6, window_bounds = array<i64: 1, 8, 32>}]} {
    %c0_i32 = arith.constant 0 : i32
    %0 = arith.cmpi eq, %arg1, %c0_i32 : i32
    %1 = arith.extui %0 : i1 to i32
    %c0_i32_0 = arith.constant 0 : i32
    %2 = arith.cmpi ne, %1, %c0_i32_0 : i32
    scf.if %2 {
      %cst_29 = arith.constant 0.000000e+00 : f32
      %42 = vector.broadcast %cst_29 : f32 to vector<8x32xf32>
      %c0_30 = arith.constant 0 : index
      %c0_31 = arith.constant 0 : index
      %43 = vector.load %arg9[%c0_30, %c0_31] : memref<8x32xf32, #tpu.memory_space<vmem>>, vector<8x32xf32>
      tpu.vector_store %arg9[%c0_30, %c0_31], %42 {strides = array<i32>} : memref<8x32xf32, #tpu.memory_space<vmem>>, vector<8x32xf32>,
    } else {
    }
    %c0 = arith.constant 0 : index
    %c0_1 = arith.constant 0 : index
    %c0_2 = arith.constant 0 : index
    %3 = vector.load %arg2[%c0, %c0_1, %c0_2] : memref<1x8x32xf32, #tpu.memory_space<vmem>>, vector<1x8x32xf32>
    %4 = vector.shape_cast %3 : vector<1x8x32xf32> to vector<8x32xf32>
    %c0_3 = arith.constant 0 : index
    %c0_4 = arith.constant 0 : index
    %c0_5 = arith.constant 0 : index
    %5 = vector.load %arg3[%c0_3, %c0_4, %c0_5] : memref<1x32x8xf32, #tpu.memory_space<vmem>>, vector<1x32x8xf32>
    %6 = vector.shape_cast %5 : vector<1x32x8xf32> to vector<32x8xf32>
    %c0_6 = arith.constant 0 : index
    %c0_7 = arith.constant 0 : index
    %c0_8 = arith.constant 0 : index
    %7 = vector.load %arg4[%c0_6, %c0_7, %c0_8] : memref<1x32x8xf32, #tpu.memory_space<vmem>>, vector<1x32x8xf32>
    %8 = vector.shape_cast %7 : vector<1x32x8xf32> to vector<32x8xf32>
    %c0_9 = arith.constant 0 : index
    %c0_10 = arith.constant 0 : index
    %c0_11 = arith.constant 0 : index
    %9 = vector.load %arg5[%c0_9, %c0_10, %c0_11] : memref<1x32x8xf32, #tpu.memory_space<vmem>>, vector<1x32x8xf32>
    %10 = vector.shape_cast %9 : vector<1x32x8xf32> to vector<32x8xf32>
    %cst = arith.constant dense<0.000000e+00> : vector<8x8xf32>
    %11 = tpu.matmul %4, %6, %cst {dimension_numbers = #tpu.dot_dimension_numbers<[1], [0], [0], [1], [0, 0, 1, 1], [], []>} : vector<8x32xf32>, vector<32x8xf32>, vector<8x8xf32> -> vector<8x8xf32>
    %cst_12 = arith.constant dense<0.000000e+00> : vector<8x8xf32>
    %12 = tpu.matmul %4, %8, %cst_12 {dimension_numbers = #tpu.dot_dimension_numbers<[1], [0], [0], [1], [0, 0, 1, 1], [], []>} : vector<8x32xf32>, vector<32x8xf32>, vector<8x8xf32> -> vector<8x8xf32>
    %cst_13 = arith.constant dense<0.000000e+00> : vector<8x8xf32>
    %13 = tpu.matmul %4, %10, %cst_13 {dimension_numbers = #tpu.dot_dimension_numbers<[1], [0], [0], [1], [0, 0, 1, 1], [], []>} : vector<8x32xf32>, vector<32x8xf32>, vector<8x8xf32> -> vector<8x8xf32>
    %14 = tpu.transpose %12, [1, 0] : vector<8x8xf32> -> vector<8x8xf32>
    %cst_14 = arith.constant dense<0.000000e+00> : vector<8x8xf32>
    %15 = tpu.matmul %11, %14, %cst_14 {dimension_numbers = #tpu.dot_dimension_numbers<[1], [0], [0], [1], [0, 0, 1, 1], [], []>} : vector<8x8xf32>, vector<8x8xf32>, vector<8x8xf32> -> vector<8x8xf32>
    %cst_15 = arith.constant 0.353553385 : f32
    %16 = vector.broadcast %cst_15 : f32 to vector<8x8xf32>
    %17 = arith.mulf %15, %16 : vector<8x8xf32>
    %18 = tpu.iota {dimensions = array<i32: 0>} : vector<8x8xi32>
    %19 = tpu.iota {dimensions = array<i32: 1>} : vector<8x8xi32>
    %20 = arith.cmpi sgt, %19, %18 : vector<8x8xi32>
    %cst_16 = arith.constant -3.40282347E+38 : f32
    %21 = vector.broadcast %cst_16 : f32 to vector<8x8xf32>
    %22 = arith.select %20, %21, %17 : vector<8x8xi1>, vector<8x8xf32>
    %cst_17 = arith.constant dense<0xFF800000> : vector<8xf32>
    %23 = vector.multi_reduction <maximumf>, %22, %cst_17 [1] : vector<8x8xf32> to vector<8xf32>
    %24 = vector.shape_cast %23 : vector<8xf32> to vector<8x1xf32>
    %25 = vector.broadcast %24 : vector<8x1xf32> to vector<8x8xf32>
    %26 = arith.subf %22, %25 : vector<8x8xf32>
    %27 = math.exp %26 : vector<8x8xf32>
    %cst_18 = arith.constant dense<0.000000e+00> : vector<8xf32>
    %28 = vector.multi_reduction <add>, %27, %cst_18 [1] : vector<8x8xf32> to vector<8xf32>
    %29 = vector.shape_cast %28 : vector<8xf32> to vector<8x1xf32>
    %30 = vector.broadcast %29 : vector<8x1xf32> to vector<8x8xf32>
    %31 = arith.divf %27, %30 : vector<8x8xf32>
    %cst_19 = arith.constant dense<0.000000e+00> : vector<8x8xf32>
    %32 = tpu.matmul %31, %13, %cst_19 {dimension_numbers = #tpu.dot_dimension_numbers<[1], [0], [0], [1], [0, 0, 1, 1], [], []>} : vector<8x8xf32>, vector<8x8xf32>, vector<8x8xf32> -> vector<8x8xf32>
    %c0_20 = arith.constant 0 : index
    %c0_21 = arith.constant 0 : index
    %c0_22 = arith.constant 0 : index
    %33 = vector.load %arg6[%c0_20, %c0_21, %c0_22] : memref<1x8x32xf32, #tpu.memory_space<vmem>>, vector<1x8x32xf32>
    %34 = vector.shape_cast %33 : vector<1x8x32xf32> to vector<8x32xf32>
    %c0_23 = arith.constant 0 : index
    %c0_24 = arith.constant 0 : index
    %35 = vector.load %arg9[%c0_23, %c0_24] : memref<8x32xf32, #tpu.memory_space<vmem>>, vector<8x32xf32>
    %cst_25 = arith.constant dense<0.000000e+00> : vector<8x32xf32>
    %36 = tpu.matmul %32, %34, %cst_25 {dimension_numbers = #tpu.dot_dimension_numbers<[1], [0], [0], [1], [0, 0, 1, 1], [], []>} : vector<8x8xf32>, vector<8x32xf32>, vector<8x32xf32> -> vector<8x32xf32>
    %37 = arith.addf %35, %36 : vector<8x32xf32>
    %c0_26 = arith.constant 0 : index
    %c0_27 = arith.constant 0 : index
    %38 = vector.load %arg9[%c0_26, %c0_27] : memref<8x32xf32, #tpu.memory_space<vmem>>, vector<8x32xf32>
    tpu.vector_store %arg9[%c0_26, %c0_27], %37 {strides = array<i32>} : memref<8x32xf32, #tpu.memory_space<vmem>>, vector<8x32xf32>,
    %c3_i32 = arith.constant 3 : i32
    %39 = arith.cmpi eq, %arg1, %c3_i32 : i32
    %40 = arith.extui %39 : i1 to i32
    %c0_i32_28 = arith.constant 0 : i32
    %41 = arith.cmpi ne, %40, %c0_i32_28 : i32
    scf.if %41 {
      %c0_29 = arith.constant 0 : index
      %c0_30 = arith.constant 0 : index
      %42 = vector.load %arg7[%c0_29, %c0_30] : memref<1x32xf32, #tpu.memory_space<vmem>>, vector<1x32xf32>
      %c0_31 = arith.constant 0 : index
      %c0_32 = arith.constant 0 : index
      %43 = vector.load %arg9[%c0_31, %c0_32] : memref<8x32xf32, #tpu.memory_space<vmem>>, vector<8x32xf32>
      %44 = vector.broadcast %42 : vector<1x32xf32> to vector<8x32xf32>
      %45 = arith.addf %43, %44 : vector<8x32xf32>
      %c0_33 = arith.constant 0 : index
      %c0_34 = arith.constant 0 : index
      %c0_35 = arith.constant 0 : index
      %46 = vector.load %arg8[%c0_33, %c0_34, %c0_35] : memref<1x8x32xf32, #tpu.memory_space<vmem>>, vector<1x8x32xf32>
      %47 = vector.shape_cast %46 : vector<1x8x32xf32> to vector<8x32xf32>
      %48 = vector.shape_cast %45 : vector<8x32xf32> to vector<1x8x32xf32>
      tpu.vector_store %arg8[%c0_33, %c0_34, %c0_35], %48 {strides = array<i32>} : memref<1x8x32xf32, #tpu.memory_space<vmem>>, vector<1x8x32xf32>,
    } else {
    }
    return
  }
  func.func @transform_0(%arg0: i32, %arg1: i32) -> (i32, i32, i32) {
    %c0_i32 = arith.constant 0 : i32
    %c0_i32_0 = arith.constant 0 : i32
    %c0_i32_1 = arith.constant 0 : i32
    return %arg0, %c0_i32, %c0_i32_0 : i32, i32, i32
  }
  func.func @transform_1(%arg0: i32, %arg1: i32) -> (i32, i32, i32) {
    %c0_i32 = arith.constant 0 : i32
    %c0_i32_0 = arith.constant 0 : i32
    %c0_i32_1 = arith.constant 0 : i32
    return %arg1, %c0_i32, %c0_i32_0 : i32, i32, i32
  }
  func.func @transform_2(%arg0: i32, %arg1: i32) -> (i32, i32, i32) {
    %c0_i32 = arith.constant 0 : i32
    %c0_i32_0 = arith.constant 0 : i32
    %c0_i32_1 = arith.constant 0 : i32
    return %arg1, %c0_i32, %c0_i32_0 : i32, i32, i32
  }
  func.func @transform_3(%arg0: i32, %arg1: i32) -> (i32, i32, i32) {
    %c0_i32 = arith.constant 0 : i32
    %c0_i32_0 = arith.constant 0 : i32
    %c0_i32_1 = arith.constant 0 : i32
    return %arg1, %c0_i32, %c0_i32_0 : i32, i32, i32
  }
  func.func @transform_4(%arg0: i32, %arg1: i32) -> (i32, i32, i32) {
    %c0_i32 = arith.constant 0 : i32
    %c0_i32_0 = arith.constant 0 : i32
    %c0_i32_1 = arith.constant 0 : i32
    return %arg1, %c0_i32, %c0_i32_0 : i32, i32, i32
  }
  func.func @transform_5(%arg0: i32, %arg1: i32) -> (i32, i32) {
    %c0_i32 = arith.constant 0 : i32
    %c0_i32_0 = arith.constant 0 : i32
    %c0_i32_1 = arith.constant 0 : i32
    return %c0_i32, %c0_i32_0 : i32, i32
  }
  func.func @transform_6(%arg0: i32, %arg1: i32) -> (i32, i32, i32) {
    %c0_i32 = arith.constant 0 : i32
    %c0_i32_0 = arith.constant 0 : i32
    %c0_i32_1 = arith.constant 0 : i32
    return %arg0, %c0_i32, %c0_i32_0 : i32, i32, i32
  }
}

</mosaic_0001>

<bundles_post_ra>
// kernel: tpu_custom_call.1
= control target key start
LH: loop header
LB: loop body
LE: loop exit
PB: predicated region body
PF: predicated region fallthrough
CT: control target
= control target key end

     0   :  { %11 = vsyncpa [#allocation4], 0  ;;  %s1078_s0 = inlined_call_operand.vmem [shape: f32[2,8,32], index: 0, kind: input, shape index: {}]   ;;  %s1079_s1 = inlined_call_operand.vmem [shape: f32[4,32,8], index: 1, kind: input, shape index: {}]   ;;  %s1080_s2 = inlined_call_operand.vmem [shape: f32[4,32,8], index: 2, kind: input, shape index: {}]   ;;  %s1081_s3 = inlined_call_operand.vmem [shape: f32[4,32,8], index: 3, kind: input, shape index: {}]   ;;  %s1082_s4 = inlined_call_operand.vmem [shape: f32[4,8,32], index: 4, kind: input, shape index: {}]   ;;  %s1083_s5 = inlined_call_operand.vmem [shape: f32[1,32], index: 5, kind: input, shape index: {}]   ;;  %s1084_s6 = inlined_call_operand.hbm [shape: f32[2,8,32], index: 6, kind: output, shape index: {}]  }
   0x1   :  { %13 = vsyncpa [#allocation4 + $0x1], 0  ;;  %s911_s21 = smov 0   ;;  %s913_s22 = smov 0  }
   0x2   :  { %s915_s23 = smov 0   ;;  %s917_s24 = smov 0  }
   0x3   :  { %s919_s25 = smov 0   ;;  %s921_s26 = smov 0  }
   0x4   :  { %s923_s27 = smov 0   ;;  %s925_s28 = smov 0  }
   0x5 LB: > { %1092 = sst [smem:[#allocation6_spill]] %s845_s21  ;;  %s672_s29 = sadd.s32 4294967295, %s873_s28   ;;  %s873_s28 = sphi %s925_s28, %s19_s28   ;;  %s869_s27 = sphi %s923_s27, %s1110_s27   ;;  %s865_s26 = sphi %s921_s26, %s1114_s26   ;;  %s861_s25 = sphi %s919_s25, %s1108_s25   ;;  %s857_s24 = sphi %s917_s24, %s1107_s24   ;;  %s853_s23 = sphi %s915_s23, %s1113_s23   ;;  %s849_s22 = sphi %s913_s22, %s1112_s22   ;;  %s845_s21 = sphi %s911_s21, %s1111_s21  }
   0x6   : > { %1093 = sst [smem:[#allocation7_spill]] %s853_s23  ;;  %s673_s30 = sadd.s32 4294967294, %s873_s28  }
   0x7   : > { %1094 = sst [smem:[#allocation8_spill]] %s865_s26  ;;  %s28_s7 = sadd.s32 1, %s865_s26 }
   0x8   : > { %1095 = sst [smem:[#allocation9_spill]] %s869_s27  ;;  %p29_p0 = scmp.ge.s32.totalorder %s28_s7, 4 }
   0x9   : > { %s31_s8 = sadd.s32 1, %s869_s27  ;;  %p199_p1 = scmp.ne.s32.totalorder %s853_s23, %s849_s22 }
   0xa   : > { %p200_p2 = scmp.eq.s32.totalorder %s672_s29, 7  ;;  %s1116_s7 = smov (%p29_p0, %s28_s7), 0 }
   0xb   : > { %1096 = sst [smem:[#allocation10_spill]] %s1116_s7  ;;  %s1118_s8 = smov (!%p29_p0, %s31_s8), %s869_s27 }
   0xc   : > { %p960_p3 = por %p200_p2, %p199_p1  ;;  %p205_p4 = scmp.ne.s32.totalorder %s849_s22, %s845_s21 }
   0xd   : > { %p33_p5 = scmp.ge.s32.totalorder %s1118_s8, 2  ;;  %p206_p6 = scmp.eq.s32.totalorder %s673_s30, 7 }
   0xe   : > { %p676_p7 = scmp.ge.s32.totalorder %s873_s28, 1  ;;  %p265_p8 = scmp.lt.s32.totalorder %s873_s28, 9 }
   0xf   : > { %s1120_s8 = smov (%p33_p5, %s1118_s8), 0  ;;  %p970_p9 = por %p206_p6, %p205_p4 }
  0x10   : > { %1098 = sst [smem:[#allocation11_spill]] %s1120_s8  ;;  %p266_p10 = pnand %p676_p7, %p265_p8 }
  0x11   : > { %s1099_s10 = scalar_select %p970_p9, 1, 0 }
  0x12   : > { %s186_s11 = ssub.s32 %s869_s27, %s1120_s8  ;;  %s189_s12 = sadd.s32 1, %s853_s23 }
  0x13   : > { %1100 = sst [smem:[#allocation12_spill]] %s1099_s10  ;;  %p187_p11 = scmp.eq.s32.totalorder %s186_s11, 0 }
  0x14   : > { %269 = sbr.rel (%p266_p10) target bundleno = 856 (0x358), region = 44  ;;  %s1088_s14 = sand.u32 (!%p266_p10), 1, %s849_s22  }
  0x15   : > { %s978_s13 = scalar_select %p187_p11, %s853_s23, %s189_s12  }
  0x16   : > { %p313_p12 = scmp.lt.s32.totalorder (!%p266_p10), %s861_s25, 1  ;;  %s984_s15 = sshll.u32 (!%p266_p10), %s1088_s14, 3 }
  0x17   : > { %1101 = sst [smem:[#allocation13_spill]] %s978_s13  ;;  %p317_p13 = scmp.lt.s32.totalorder (!%p266_p10), %s857_s24, 3 }
  0x18   : > { %p686_p0 = scmp.ne.s32.totalorder (!%p266_p10), %s857_s24, 0 }
  0x19   : > { %s314_s16 = scalar_select %p313_p12, %s861_s25, 1 }
  0x1a   : > { %s318_s17 = scalar_select %p317_p13, %s857_s24, 3 }
  0x1b   : > { %s678_s18 = sshll.u32 %s314_s16, 3  ;;  %339 = sbr.rel (%p686_p0) target bundleno = 34 (0x22), region = 48 }
  0x1c   : > { %s316_s29 = scalar_lea.vmem %s1078_s0, %s678_s18  ;;  %s699_s30 = sshll.u32 %s318_s17, 5 }
  0x1d   : > { %s321_s8 = scalar_lea.vmem %s1079_s1, %s699_s30  ;;  %s326_s26 = scalar_lea.vmem %s1080_s2, %s699_s30 }
  0x1e   : > { %s1001_s23 = scalar_lea.vmem %s1081_s3, %s699_s30  ;;  %s685_s10 = sshll.u32 %s318_s17, 3 }
  0x1f   : > { %s1006_s19 = scalar_lea.vmem %s1082_s4, %s685_s10  ;;  %s312_s18 = scalar_lea.vmem [#allocation3], %s984_s15 }
  0x20   : > { %vm340_vm0 = vcmask 261120   ;;  %v875_v0 = vmov 0.0  }
  0x21   : > { %341 = vst.msk [vmem:[#allocation2] sm:$0xff] %vm340_vm0, %v875_v0 }
  0x22 PF: > { %v350_v1 = vld [vmem:[%s326_s26 + $0x18] sm:$0xff]  ;;  %v349_v2 = vld [vmem:[%s326_s26 + $0x10] sm:$0xff]  ;;  %v348_v5 = vld [vmem:[%s326_s26 + $0x8] sm:$0xff]  ;;  %vm355_vm1 = vcmask 261120   ;;  %vm419_vm2 = vcmask 64512   ;;  %v447_v12 = vlaneseq  ;;  %p694_p1 = scmp.ne.s32.totalorder %s857_s24, 3 }
  0x23   : > { %v346_v3 = vld [vmem:[%s321_s8 + $0x18] sm:$0xff]  ;;  %391 = vmatpush.msra.mxu1 %v350_v1  ;;  %v345_v4 = vld [vmem:[%s321_s8 + $0x10] sm:$0xff]  ;;  %v344_v6 = vld [vmem:[%s321_s8 + $0x8] sm:$0xff] }
  0x24   : > { %371 = vmatpush.msra.mxu0 %v346_v3  ;;  %v347_v7 = vld [vmem:[%s326_s26] sm:$0xff]  ;;  %v448_v13 = vshrl.u32 %v447_v12, 7  ;;  %v450_v14 = vand.u32 127, %v447_v12  ;;  %v354_v19 = vld [vmem:[%s1001_s23 + $0x18] sm:$0xff]  ;;  %v353_v20 = vld [vmem:[%s1001_s23 + $0x10] sm:$0xff] }
  0x25   : > { %392 = vmatpush.msra.mxu1 %v349_v2  ;;  %v343_v8 = vld [vmem:[%s321_s8] sm:$0xff]  ;;  %411 = vmatpush.msra.mxu2 %v354_v19  ;;  %v352_v21 = vld [vmem:[%s1001_s23 + $0x8] sm:$0xff] }
  0x26   : > { %372 = vmatpush.msra.mxu0 %v345_v4  ;;  %v342_v9 = vld [vmem:[%s316_s29] sm:$0xff]  ;;  %vm451_vm3 = vcmp.gt.s32.totalorder %v450_v14, %v448_v13 }
  0x27   : > { %393 = vmatpush.msra.mxu1 %v348_v5  ;;  %412 = vmatpush.msra.mxu2 %v353_v20  ;;  %v351_v22 = vld [vmem:[%s1001_s23] sm:$0xff] }
  0x28   : > { %373 = vmatpush.msra.mxu0 %v344_v6  ;;  %v500_v29 = vld [vmem:[%s1006_s19] sm:$0xff] }
  0x29   : > { %394 = vmatpush.msra.mxu1 %v347_v7  ;;  %413 = vmatpush.msra.mxu2 %v352_v21  ;;  %v501_v43 = vld [vmem:[#allocation2] sm:$0xff] }
  0x2a   : > { %374 = vmatpush.msra.mxu0 %v343_v8  ;;  %688 = vmatmul.msk.f32.vlgmr.msra.gmra.mxu1 %vm355_vm1, %v342_v9 }
  0x2b   : > { %687 = vmatmul.msk.f32.vlgmr.msra.gmra.mxu0 %vm355_vm1, %v342_v9  ;;  %414 = vmatpush.msra.mxu2 %v351_v22 }
  0x2c   : > { %689 = vmatmul.msk.f32.vlgmr.msra.gmra.mxu2 %vm355_vm1, %v342_v9  ;;  %520 = vmatpush.msrb.mxu0 %v500_v29 }
  0xa7   : > { %v396_v10 = vpop.f32.mrf.mxu1 }
  0xa8   : > { %690 = vmatpush.xpose.msk.msra.mxu3 %vm419_vm2, %v396_v10  ;;  %v376_v11 = vpop.f32.mrf.mxu0 }
  0xab   : > { %691 = vmatmul.msk.f32.vlgmr.msra.gmra.mxu3 %vm419_vm2, %v376_v11 }
  0xaf   : > { %v416_v28 = vpop.f32.mrf.mxu2 }
  0xb0   : > { %495 = vmatpush.msrb.mxu3 %v416_v28 }
 0x12e   : > { %v443_v15 = vpop.f32.mrf.mxu3 }
 0x12f   : > { %v446_v16 = vmul.f32 0.35355338, %v443_v15 }
 0x131   : > { %v452_v17 = vsel %vm451_vm3, -3.4028235e+38, %v446_v16 }
 0x132   : > { %v453_v18 = vsel %vm419_vm2, %v452_v17, -inf }
 0x133   : > { %454 = vmax.xlane.f32.xlu0 %v453_v18 }
 0x1a6   : > { %v455_v23 = vpop.xlane.xlu0 %454 }
 0x1a7   : > { %v456_v24 = vsub.f32 %v452_v17, %v455_v23 }
 0x1a9   : > { %v457_v25 = vmul.f32 1.442695, %v456_v24 }
 0x1ab   : > { %774 = vpow2.f32 %v457_v25 }
 0x1b1   : > { %v775_v26 = vpop.eup %774 }
 0x1b2   : > { %v459_v27 = vsel %vm419_vm2, %v775_v26, 0.0 }
 0x1b3   : > { %460 = vadd.xlane.f32.xlu0 %v459_v27 }
 0x226   : > { %v461_v30 = vpop.xlane.xlu0 %460 }
 0x227   : > { %776 = vrcp.f32 %v461_v30  ;;  %v473_v34 = vand.u32 2147483648, %v461_v30  ;;  %v471_v36 = vand.u32 2147483647, %v461_v30  ;;  %vm467_vm5 = vweird.f32 %v461_v30 }
 0x229   : > { %v474_v38 = vor.u32 1.1754944e-38, %v473_v34  ;;  %vm472_vm7 = vcmp.eq.f32.partialorder %v471_v36, 8.507059e+37 }
 0x22d   : > { %v777_v31 = vpop.eup %776 }
 0x22e   : > { %v463_v32 = vmul.f32 %v777_v31, %v461_v30  ;;  %vm468_vm4 = vweird.f32 %v777_v31 }
 0x22f   : > { %vm469_vm6 = vmor %vm467_vm5, %vm468_vm4 }
 0x230   : > { %v464_v33 = vsub.f32 1.0, %v463_v32 }
 0x232   : > { %v465_v35 = vmul.f32 %v777_v31, %v464_v33 }
 0x234   : > { %v466_v37 = vadd.f32 %v777_v31, %v465_v35 }
 0x236   : > { %v470_v39 = vsel %vm469_vm6, %v777_v31, %v466_v37 }
 0x237   : > { %v475_v40 = vsel %vm472_vm7, %v474_v38, %v470_v39 }
 0x238   : > { %v476_v41 = vmul.f32 %v775_v26, %v475_v40 }
 0x23a   : > { %692 = vmatmul.msk.f32.vlgmr.msrb.gmra.mxu3 %vm419_vm2, %v476_v41 }
 0x2bd   : > { %v497_v42 = vpop.f32.mrf.mxu3 }
 0x2be   : > { %693 = vmatmul.msk.f32.vlgmr.msrb.gmra.mxu0 %vm419_vm2, %v497_v42 }
 0x33a   : > { %530 = sbr.rel (%p694_p1) target bundleno = 841 (0x349), region = 52 }
 0x33b   : > { %v522_v44 = vpop.f32.mrf.mxu0 }
 0x33c   : > { %v525_v45 = vadd.f32 %v522_v44, %v501_v43 }
 0x33e   : > { %526 = vst.msk [vmem:[#allocation2] sm:$0xff] %vm355_vm1, %v525_v45 }
 0x33f   : > { %v778_v47 = vld [vmem:[%s1083_s5] ss:$0 sm:$0xff] }
 0x345   : > { %v532_v46 = vld [vmem:[#allocation2] sm:$0xff] }
 0x346   : > { %v536_v48 = vadd.f32 %v778_v47, %v532_v46 }
 0x348   : > { %537 = vst.msk [vmem:[%s312_s18] sm:$0xff] %vm355_vm1, %v536_v48 }
 0x349 PF: > { %s696_s26 = sshll.u32 %s861_s25, 3  ;;  %s551_s8 = sshll.u32 %s312_s18, 4  ;;  %s552_s8 = int_to_ptr.vmem [resolvable:$true] %s551_s8 }
 0x34a   : > { %s549_s24 = scalar_lea.hbm %s1084_s6, %s696_s26  ;;  %s1102_s13 = sand.u32 1, %s849_s22  }
 0x34b   : > { %s553_s10 = sshll.u32 %s549_s24, 4  ;;  %s539_s14 = scalar_lea.sflag [#allocation4], %s1102_s13  ;;  %s554_s10 = int_to_ptr.hbm [resolvable:$true] %s553_s10 }
 0x34c   : > { %s793_s17 = sshra.s32 %s554_s10, 4  ;;  %s799_s30 = scalar_lea.hbm %s1084_s6, 16  ;;  %s794_s17 = int_to_ptr.hbm [resolvable:$true] %s793_s17 }
 0x34d   : > { %s795_s20 = scalar_lea.hbm %s794_s17, 8  ;;  %p800_p6 = scmp.lt.s32.totalorder %s794_s17, %s1084_s6 }
 0x34e   : > { %p796_p2 = scmp.ne.s32.totalorder %s794_s17, %s795_s20  ;;  %p801_p7 = scmp.lt.s32.totalorder %s799_s30, %s795_s20 }
 0x350   : > { %p797_p4 = pnand %p796_p2, %p960_p3  ;;  %p802_p8 = por %p801_p7, %p800_p6 }
 0x352   : > { %p798_p5 = pneg %p797_p4 }
 0x354   : > { %p803_p10 = pnand %p802_p8, %p798_p5 }
 0x356   : > { %806 = shalt.err (!%p803_p10)
}
 0x357   : > { %702 = dma.vmem_to_hbm [thread:$0]  (%p960_p3), %s552_s8, 128, %s554_s10, %s539_s14  }
 0x358 PF: > { %s1103_s15 = sld [smem:[#allocation6_spill]]  ;;  %p708_p11 = scmp.ge.s32.totalorder %s873_s28, 2 }
 0x35a   : > { %p705_p12 = pnand %p708_p11, %p970_p9 }
 0x35c   : > { %p706_p13 = pneg %p705_p12 }
 0x35e   : > { %s565_s19 = sand.u32 1, %s1103_s15  }
 0x35f   : > { %s566_s18 = scalar_lea.sflag [#allocation4], %s565_s19 }
 0x360   : > { %840 = dma.done.wait (%p706_p13), %s566_s18, 128  }
 0x361   : > { %842 = vsyncadd (%p706_p13), %s566_s18, 4294967168  ;;  %s19_s28 = sadd.s32 1, %s873_s28   ;;  %s1105_s23 = sld [smem:[#allocation7_spill]] }
 0x362   : > { %p16_p0 = scmp.ge.s32.totalorder %s19_s28, 10   ;;  %s1106_s26 = sld [smem:[#allocation13_spill]] }
 0x363   : > { %s1107_s24 = sld [smem:[#allocation8_spill]]  ;;  %s1111_s21 = smov %s849_s22 }
 0x364   : > { %s1108_s25 = sld [smem:[#allocation9_spill]] }
 0x365   : > { %s1109_s9 = sld [smem:[#allocation10_spill]] }
 0x366   : > { %s1110_s27 = sld [smem:[#allocation11_spill]] }
 0x367   : > { %s1112_s22 = smov %s1105_s23  ;;  %18 = sbr.rel (!%p16_p0) target bundleno = 5 (0x5), region = 99 }
 0x368   : > { %s1113_s23 = smov %s1106_s26 }
 0x36b   : > { %s1114_s26 = smov %s1109_s9 }
 0x36c   :  { %572 = vsyncpa [#allocation4], 1 }
 0x36d   :  { %574 = vsyncpa [#allocation4 + $0x1], 1 }

</bundles_post_ra>
